<compile_context>
chip_gen: v6e
topology: v6e:2x2x1
jax: 0.10.0
libtpu: 0.0.40
codegen_flags: <defaults>
</compile_context>

<pallas_src>
import functools

import jax
import jax.numpy as jnp
from jax.experimental import pallas as pl
from jax.experimental.pallas import tpu as pltpu


# ---------------------------------------------------------------------------
# Kernel: one batch tile of the 3-layer MLP. Weights are (in, out), biases
# (1, out). All matmuls accumulate in f32 on the MXU.
# ---------------------------------------------------------------------------
def actor_kernel(x_ref, w1_ref, b1_ref, w2_ref, b2_ref, w3_ref, b3_ref,
                 mu_ref):
    x = x_ref[...]

    # Layer 1: Linear + ReLU
    h1 = jnp.dot(x, w1_ref[...], preferred_element_type=jnp.float32) + b1_ref[...]
    h1 = jnp.maximum(h1, 0.0)

    # Layer 2: Linear + ReLU
    h2 = jnp.dot(h1, w2_ref[...], preferred_element_type=jnp.float32) + b2_ref[...]
    h2 = jnp.maximum(h2, 0.0)

    # Layer 3: Linear + Tanh  -> mu
    mu = jnp.dot(h2, w3_ref[...], preferred_element_type=jnp.float32) + b3_ref[...]
    mu_ref[...] = jnp.tanh(mu).astype(mu_ref.dtype)


def _round_up(x, m):
    return ((x + m - 1) // m) * m


def prepare_params(params):
    """One-time layout prep: PyTorch (out, in) weights -> (in, out); biases and
    log_std -> (1, out) rows. Do this once at parameter-creation time, not per
    forward call."""
    w1, b1, w2, b2, w3, b3, log_std = params
    hidden_dim = w1.shape[0]
    output_dim = w3.shape[0]
    return dict(
        w1=jnp.asarray(w1).T,                       # (input_dim, hidden_dim)
        b1=jnp.asarray(b1).reshape(1, hidden_dim),
        w2=jnp.asarray(w2).T,                       # (hidden_dim, hidden_dim)
        b2=jnp.asarray(b2).reshape(1, hidden_dim),
        w3=jnp.asarray(w3).T,                       # (hidden_dim, output_dim)
        b3=jnp.asarray(b3).reshape(1, output_dim),
        log_std=jnp.asarray(log_std).reshape(1, output_dim),
    )


@functools.partial(jax.jit, static_argnames=("tile_b",))
def actor_forward(state, prepared, tile_b=512):
    """ActorNetwork forward. Returns (mu, std) of the Normal distribution.

    `prepared` is the output of prepare_params(). The batch is tiled with a
    1-D parallel grid; weights stay resident in VMEM across tiles.
    """
    w1, b1 = prepared["w1"], prepared["b1"]
    w2, b2 = prepared["w2"], prepared["b2"]
    w3, b3 = prepared["w3"], prepared["b3"]
    log_std = prepared["log_std"]

    B, input_dim = state.shape
    hidden_dim = w1.shape[1]
    output_dim = w3.shape[1]

    # Batch tile: multiple of 8 sublanes, capped so VMEM stays well under the
    # scoped limit on every generation (v7x has only 64 MiB physical VMEM).
    tb = min(int(tile_b), _round_up(B, 8))
    tb = _round_up(tb, 8)
    padded_b = _round_up(B, tb)

    x = state.astype(jnp.float32)
    if padded_b != B:
        x = jnp.pad(x, ((0, padded_b - B), (0, 0)))

    grid = (padded_b // tb,)

    # Weights / biases: same block for every grid step -> single DMA, resident
    # in VMEM for the whole grid.
    const = lambda shape: pl.BlockSpec(shape, lambda i: (0,) * len(shape))

    mu = pl.pallas_call(
        actor_kernel,
        out_shape=jax.ShapeDtypeStruct((padded_b, output_dim), jnp.float32),
        grid=grid,
        in_specs=[
            pl.BlockSpec((tb, input_dim), lambda i: (i, 0)),   # state tile
            const((input_dim, hidden_dim)),
            const((1, hidden_dim)),
            const((hidden_dim, hidden_dim)),
            const((1, hidden_dim)),
            const((hidden_dim, output_dim)),
            const((1, output_dim)),
        ],
        out_specs=pl.BlockSpec((tb, output_dim), lambda i: (i, 0)),
        compiler_params=pltpu.CompilerParams(
            dimension_semantics=("parallel",)),
    )(x, w1, b1, w2, b2, w3, b3)

    mu = mu[:B]
    # std is batch-independent: compute outside the kernel, broadcast over B.
    std = jnp.broadcast_to(jnp.exp(log_std), (B, output_dim))
    return mu, std


# ---------------------------------------------------------------------------
# Parameter init (PyTorch layout) + pure-JAX reference for correctness checks.
# ---------------------------------------------------------------------------
def init_params(key, input_dim, output_dim, hidden_dim):
    """Deterministic init matching the nn.Module's parameter shapes."""
    k1, k2, k3, k4, k5, k6 = jax.random.split(key, 6)

    def linear(kw, kb, fan_in, fan_out):
        bound = 1.0 / jnp.sqrt(fan_in)
        w = jax.random.uniform(kw, (fan_out, fan_in), jnp.float32, -bound, bound)
        b = jax.random.uniform(kb, (fan_out,), jnp.float32, -bound, bound)
        return w, b

    w1, b1 = linear(k1, k2, input_dim, hidden_dim)
    w2, b2 = linear(k3, k4, hidden_dim, hidden_dim)
    w3, b3 = linear(k5, k6, hidden_dim, output_dim)
    log_std = jnp.zeros((output_dim,), jnp.float32)   # nn.Parameter(torch.zeros(output_dim))
    return (w1, b1, w2, b2, w3, b3, log_std)


def actor_forward_ref(state, params):
    w1, b1, w2, b2, w3, b3, log_std = params
    h1 = jnp.maximum(state @ w1.T + b1, 0.0)
    h2 = jnp.maximum(h1 @ w2.T + b2, 0.0)
    mu = jnp.tanh(h2 @ w3.T + b3)
    std = jnp.broadcast_to(jnp.exp(log_std)[None, :], mu.shape)
    return mu, std


if __name__ == "__main__":
    B = 8
    input_dim = 16
    hidden_dim = 32
    output_dim = 8

    key = jax.random.PRNGKey(0)
    k_params, k_state = jax.random.split(key)
    params = init_params(k_params, input_dim, output_dim, hidden_dim)
    prepared = prepare_params(params)     # one-time layout prep (not per-call)
    state = jax.random.normal(k_state, (B, input_dim), jnp.float32)

    mu, std = actor_forward(state, prepared)
    jax.block_until_ready((mu, std))

    mu_ref, std_ref = actor_forward_ref(state, params)
    assert jnp.allclose(mu, mu_ref, atol=1e-5, rtol=1e-5)
    assert jnp.allclose(std, std_ref, atol=1e-6, rtol=1e-6)

    print("KERNEL_OK")
</pallas_src>

<mosaic_0001>
module attributes {stable_mosaic.version = 11 : i64} {
  func.func @actor_kernel(%arg0: i32, %arg1: memref<8x16xf32, #tpu.memory_space<vmem>>, %arg2: memref<16x32xf32, #tpu.memory_space<vmem>>, %arg3: memref<1x32xf32, #tpu.memory_space<vmem>>, %arg4: memref<32x32xf32, #tpu.memory_space<vmem>>, %arg5: memref<1x32xf32, #tpu.memory_space<vmem>>, %arg6: memref<32x8xf32, #tpu.memory_space<vmem>>, %arg7: memref<1x8xf32, #tpu.memory_space<vmem>>, %arg8: memref<8x8xf32, #tpu.memory_space<vmem>>) attributes {dimension_semantics = [#tpu.dimension_semantics<parallel>], iteration_bounds = array<i64: 1>, scalar_prefetch = 0 : i64, scratch_operands = 0 : i64, tpu.core_type = #tpu.core_type<tc>, window_params = [{transform_indices = @transform_0, window_bounds = array<i64: 8, 16>}, {pipeline_mode = #tpu.pipeline_mode<synchronous>, transform_indices = @transform_1, window_bounds = array<i64: 16, 32>}, {pipeline_mode = #tpu.pipeline_mode<synchronous>, transform_indices = @transform_2, window_bounds = array<i64: 1, 32>}, {pipeline_mode = #tpu.pipeline_mode<synchronous>, transform_indices = @transform_3, window_bounds = array<i64: 32, 32>}, {pipeline_mode = #tpu.pipeline_mode<synchronous>, transform_indices = @transform_4, window_bounds = array<i64: 1, 32>}, {pipeline_mode = #tpu.pipeline_mode<synchronous>, transform_indices = @transform_5, window_bounds = array<i64: 32, 8>}, {pipeline_mode = #tpu.pipeline_mode<synchronous>, transform_indices = @transform_6, window_bounds = array<i64: 1, 8>}, {transform_indices = @transform_7, window_bounds = array<i64: 8, 8>}]} {
    %c0 = arith.constant 0 : index
    %c0_0 = arith.constant 0 : index
    %0 = vector.load %arg1[%c0, %c0_0] : memref<8x16xf32, #tpu.memory_space<vmem>>, vector<8x16xf32>
    %c0_1 = arith.constant 0 : index
    %c0_2 = arith.constant 0 : index
    %1 = vector.load %arg2[%c0_1, %c0_2] : memref<16x32xf32, #tpu.memory_space<vmem>>, vector<16x32xf32>
    %cst = arith.constant dense<0.000000e+00> : vector<8x32xf32>
    %2 = tpu.matmul %0, %1, %cst {dimension_numbers = #tpu.dot_dimension_numbers<[1], [0], [0], [1], [0, 0, 1, 1], [], []>} : vector<8x16xf32>, vector<16x32xf32>, vector<8x32xf32> -> vector<8x32xf32>
    %c0_3 = arith.constant 0 : index
    %c0_4 = arith.constant 0 : index
    %3 = vector.load %arg3[%c0_3, %c0_4] : memref<1x32xf32, #tpu.memory_space<vmem>>, vector<1x32xf32>
    %4 = vector.broadcast %3 : vector<1x32xf32> to vector<8x32xf32>
    %5 = arith.addf %2, %4 : vector<8x32xf32>
    %cst_5 = arith.constant 0.000000e+00 : f32
    %6 = vector.broadcast %cst_5 : f32 to vector<8x32xf32>
    %7 = arith.maximumf %5, %6 : vector<8x32xf32>
    %c0_6 = arith.constant 0 : index
    %c0_7 = arith.constant 0 : index
    %8 = vector.load %arg4[%c0_6, %c0_7] : memref<32x32xf32, #tpu.memory_space<vmem>>, vector<32x32xf32>
    %cst_8 = arith.constant dense<0.000000e+00> : vector<8x32xf32>
    %9 = tpu.matmul %7, %8, %cst_8 {dimension_numbers = #tpu.dot_dimension_numbers<[1], [0], [0], [1], [0, 0, 1, 1], [], []>} : vector<8x32xf32>, vector<32x32xf32>, vector<8x32xf32> -> vector<8x32xf32>
    %c0_9 = arith.constant 0 : index
    %c0_10 = arith.constant 0 : index
    %10 = vector.load %arg5[%c0_9, %c0_10] : memref<1x32xf32, #tpu.memory_space<vmem>>, vector<1x32xf32>
    %11 = vector.broadcast %10 : vector<1x32xf32> to vector<8x32xf32>
    %12 = arith.addf %9, %11 : vector<8x32xf32>
    %cst_11 = arith.constant 0.000000e+00 : f32
    %13 = vector.broadcast %cst_11 : f32 to vector<8x32xf32>
    %14 = arith.maximumf %12, %13 : vector<8x32xf32>
    %c0_12 = arith.constant 0 : index
    %c0_13 = arith.constant 0 : index
    %15 = vector.load %arg6[%c0_12, %c0_13] : memref<32x8xf32, #tpu.memory_space<vmem>>, vector<32x8xf32>
    %cst_14 = arith.constant dense<0.000000e+00> : vector<8x8xf32>
    %16 = tpu.matmul %14, %15, %cst_14 {dimension_numbers = #tpu.dot_dimension_numbers<[1], [0], [0], [1], [0, 0, 1, 1], [], []>} : vector<8x32xf32>, vector<32x8xf32>, vector<8x8xf32> -> vector<8x8xf32>
    %c0_15 = arith.constant 0 : index
    %c0_16 = arith.constant 0 : index
    %17 = vector.load %arg7[%c0_15, %c0_16] : memref<1x8xf32, #tpu.memory_space<vmem>>, vector<1x8xf32>
    %18 = vector.broadcast %17 : vector<1x8xf32> to vector<8x8xf32>
    %19 = arith.addf %16, %18 : vector<8x8xf32>
    %20 = math.tanh %19 : vector<8x8xf32>
    %c0_17 = arith.constant 0 : index
    %c0_18 = arith.constant 0 : index
    %21 = vector.load %arg8[%c0_17, %c0_18] : memref<8x8xf32, #tpu.memory_space<vmem>>, vector<8x8xf32>
    tpu.vector_store %arg8[%c0_17, %c0_18], %20 {strides = array<i32>} : memref<8x8xf32, #tpu.memory_space<vmem>>, vector<8x8xf32>,
    return
  }
  func.func @transform_0(%arg0: i32) -> (i32, i32) {
    %c0_i32 = arith.constant 0 : i32
    %c0_i32_0 = arith.constant 0 : i32
    return %arg0, %c0_i32 : i32, i32
  }
  func.func @transform_1(%arg0: i32) -> (i32, i32) {
    %c0_i32 = arith.constant 0 : i32
    %c0_i32_0 = arith.constant 0 : i32
    %c0_i32_1 = arith.constant 0 : i32
    return %c0_i32, %c0_i32_0 : i32, i32
  }
  func.func @transform_2(%arg0: i32) -> (i32, i32) {
    %c0_i32 = arith.constant 0 : i32
    %c0_i32_0 = arith.constant 0 : i32
    %c0_i32_1 = arith.constant 0 : i32
    return %c0_i32, %c0_i32_0 : i32, i32
  }
  func.func @transform_3(%arg0: i32) -> (i32, i32) {
    %c0_i32 = arith.constant 0 : i32
    %c0_i32_0 = arith.constant 0 : i32
    %c0_i32_1 = arith.constant 0 : i32
    return %c0_i32, %c0_i32_0 : i32, i32
  }
  func.func @transform_4(%arg0: i32) -> (i32, i32) {
    %c0_i32 = arith.constant 0 : i32
    %c0_i32_0 = arith.constant 0 : i32
    %c0_i32_1 = arith.constant 0 : i32
    return %c0_i32, %c0_i32_0 : i32, i32
  }
  func.func @transform_5(%arg0: i32) -> (i32, i32) {
    %c0_i32 = arith.constant 0 : i32
    %c0_i32_0 = arith.constant 0 : i32
    %c0_i32_1 = arith.constant 0 : i32
    return %c0_i32, %c0_i32_0 : i32, i32
  }
  func.func @transform_6(%arg0: i32) -> (i32, i32) {
    %c0_i32 = arith.constant 0 : i32
    %c0_i32_0 = arith.constant 0 : i32
    %c0_i32_1 = arith.constant 0 : i32
    return %c0_i32, %c0_i32_0 : i32, i32
  }
  func.func @transform_7(%arg0: i32) -> (i32, i32) {
    %c0_i32 = arith.constant 0 : i32
    %c0_i32_0 = arith.constant 0 : i32
    return %arg0, %c0_i32 : i32, i32
  }
}

</mosaic_0001>

<bundles_post_ra>
// kernel: actor_forward.1
= control target key start
LH: loop header
LB: loop body
LE: loop exit
PB: predicated region body
PF: predicated region fallthrough
CT: control target
= control target key end

     0   :  { %12 = vsyncpa [#allocation3], 0  ;;  %s507_s0 = inlined_call_operand.vmem [shape: f32[8,16], index: 0, kind: input, shape index: {}]   ;;  %s508_s1 = inlined_call_operand.hbm [shape: f32[16,32], index: 1, kind: input, shape index: {}]   ;;  %s509_s2 = inlined_call_operand.vmem [shape: f32[1,32], index: 2, kind: input, shape index: {}]   ;;  %s510_s3 = inlined_call_operand.vmem [shape: f32[32,32], index: 3, kind: input, shape index: {}]   ;;  %s511_s4 = inlined_call_operand.vmem [shape: f32[1,32], index: 4, kind: input, shape index: {}]   ;;  %s512_s5 = inlined_call_operand.vmem [shape: f32[32,8], index: 5, kind: input, shape index: {}]   ;;  %s513_s6 = inlined_call_operand.vmem [shape: f32[1,8], index: 6, kind: input, shape index: {}]   ;;  %s514_s7 = inlined_call_operand.hbm [shape: f32[8,8], index: 7, kind: output, shape index: {}]  }
   0x1   :  { %13 = vsyncpa [#allocation4], 0  ;;  %s414_s24 = smov [#allocation2]  }
   0x2   :  { %s21_s25 = sshll.u32 %s414_s24, 4  ;;  %s22_s25 = int_to_ptr.vmem [resolvable:$true] %s21_s25 }
   0x3   :  { %s378_s26 = scalar_lea.vmem %s22_s25, 256  ;;  %p383_p1 = scmp.lt.s32.totalorder %s22_s25, %s22_s25 }
   0x4   :  { %p379_p0 = scmp.ne.s32.totalorder %s22_s25, %s378_s26  ;;  %p384_p2 = scmp.lt.s32.totalorder %s378_s26, %s378_s26 }
   0x6   :  { %p385_p3 = por %p384_p2, %p383_p1 }
   0x8   :  { %p386_p4 = pnand %p385_p3, %p379_p0 }
   0xa   :  { %389 = shalt.err (!%p386_p4)
}
   0xb   :  { %s415_s27 = smov 128   ;;  %s416_s28 = smov 8  }
   0xc   :  { %27 = dma.hbm_to_vmem [thread:$0]  %s508_s1, 256, %s22_s25, [#allocation3], %s415_s27, %s415_s27, %s416_s28  }
   0xd   :  { %410 = dma.done.wait [#allocation3], 256  }
   0xe   :  { %411 = vsyncadd [#allocation3], 4294967040  ;;  %v417_v0 = vmov 0.0   ;;  %vm418_vm0 = vmmov 0   ;;  %v43_v1 = vld [vmem:[#allocation2 + $0x8] sm:$0xff]  ;;  %v42_v2 = vld [vmem:[#allocation2] sm:$0xff] }
   0xf   :  { %333 = vmatprep.subr.mxu0 %v417_v0  ;;  %337 = vmatprep.mubr.msk.f32.mxu0 %vm418_vm0, %v417_v0  ;;  %v41_v3 = vld [vmem:[%s507_s0] sm:$0xff]  ;;  %vm51_vm1 = vcmask 130048   ;;  %v129_v4 = vld [vmem:[%s510_s3 + $0x18] sm:$0xff]  ;;  %v128_v5 = vld [vmem:[%s510_s3 + $0x10] sm:$0xff]  ;;  %vm137_vm2 = vcmask 261120   ;;  %vm297_vm3 = vcmask 64512  }
  0x10   :  { %340 = vmatprep.subr.mxu1 %v417_v0  ;;  %348 = vmatprep.mubr.msk.f32.mxu1 %vm418_vm0, %v417_v0  ;;  %v127_v6 = vld [vmem:[%s510_s3 + $0x8] sm:$0xff]  ;;  %v126_v7 = vld [vmem:[%s510_s3] sm:$0xff]  ;;  %v215_v8 = vld [vmem:[%s512_s5 + $0x18] sm:$0xff] }
  0x11   :  { %334 = vmatpush3.msra.mxu0 %v43_v1  ;;  %341 = vmatpush3.msra.mxu1 %v129_v4  ;;  %v314_v9 = vld [vmem:[%s509_s2] ss:$0 sm:$0xff]  ;;  %v214_v14 = vld [vmem:[%s512_s5 + $0x10] sm:$0xff]  ;;  %v213_v15 = vld [vmem:[%s512_s5 + $0x8] sm:$0xff] }
  0x12   :  { %335 = vmatprep.subr.mxu0 %v417_v0  ;;  %342 = vmatprep.subr.mxu1 %v417_v0  ;;  %v212_v16 = vld [vmem:[%s512_s5] sm:$0xff]  ;;  %s419_s5 = smov [#allocation5]  }
  0x13   :  { %336 = vmatpush3.msra.mxu0 %v42_v2  ;;  %343 = vmatpush3.msra.mxu1 %v128_v5  ;;  %v316_v17 = vld [vmem:[%s511_s4] ss:$0 sm:$0xff]  ;;  %s305_s28 = sshll.u32 %s419_s5, 4  ;;  %s306_s28 = int_to_ptr.vmem [resolvable:$true] %s305_s28 }
  0x14   :  { %338 = vmatmul.mubr.msk.f32.vlgmr.msra.gmra.mxu0 %vm51_vm1, %v41_v3  ;;  %351 = vmatprep.subr.mxu0 %v417_v0  ;;  %v318_v22 = vld [vmem:[%s513_s6] ss:$0 sm:$0xff]  ;;  %s390_s4 = scalar_lea.vmem %s306_s28, 128  ;;  %p395_p6 = scmp.lt.s32.totalorder %s306_s28, %s306_s28 }
  0x15   :  { %359 = vmatprep.mubr.msk.f32.mxu0 %vm418_vm0, %v417_v0  ;;  %344 = vmatprep.subr.mxu1 %v417_v0  ;;  %p391_p5 = scmp.ne.s32.totalorder %s306_s28, %s390_s4  ;;  %p396_p7 = scmp.lt.s32.totalorder %s390_s4, %s390_s4 }
  0x16   :  { %345 = vmatpush3.msra.mxu1 %v127_v6  ;;  %352 = vmatpush3.msra.mxu0 %v215_v8 }
  0x17   :  { %346 = vmatprep.subr.mxu1 %v417_v0  ;;  %353 = vmatprep.subr.mxu0 %v417_v0  ;;  %p397_p8 = por %p396_p7, %p395_p6 }
  0x18   :  { %347 = vmatpush3.msra.mxu1 %v126_v7  ;;  %354 = vmatpush3.msra.mxu0 %v214_v14 }
  0x19   :  { %355 = vmatprep.subr.mxu0 %v417_v0  ;;  %p398_p9 = pnand %p397_p8, %p391_p5 }
  0x1a   :  { %356 = vmatpush3.msra.mxu0 %v213_v15 }
  0x1b   :  { %357 = vmatprep.subr.mxu0 %v417_v0 }
  0x1c   :  { %358 = vmatpush3.msra.mxu0 %v212_v16 }
  0xd4   :  { %v121_v10 = vpop.f32.mrf.mxu0 }
  0xd5   :  { %v122_v11 = vadd.f32 %v314_v9, %v121_v10 }
  0xd6   :  { %v339_v12 = vpop.f32.mrf.mxu0 }
  0xd7   :  { %v125_v13 = vmax.f32 %v122_v11, 0.0 }
  0xd9   :  { %349 = vmatmul.mubr.msk.f32.vlgmr.msra.gmra.mxu1 %vm137_vm2, %v125_v13 }
 0x199   :  { %v207_v18 = vpop.f32.mrf.mxu1 }
 0x19a   :  { %v208_v19 = vadd.f32 %v316_v17, %v207_v18 }
 0x19b   :  { %v350_v20 = vpop.f32.mrf.mxu1 }
 0x19c   :  { %v211_v21 = vmax.f32 %v208_v19, 0.0 }
 0x19e   :  { %360 = vmatmul.mubr.msk.f32.vlgmr.msra.gmra.mxu0 %vm137_vm2, %v211_v21 }
 0x25e   :  { %v292_v23 = vpop.f32.mrf.mxu0 }
 0x25f   :  { %v293_v24 = vadd.f32 %v318_v22, %v292_v23 }
 0x260   :  { %v361_v25 = vpop.f32.mrf.mxu0 }
 0x261   :  { %368 = vtanh.f32 %v293_v24 }
 0x26e   :  { %v369_v26 = vpop.eup %368 }
 0x26f   :  { %298 = vst.msk [vmem:[#allocation5] sm:$0xff] %vm297_vm3, %v369_v26 }
 0x270   :  { %401 = shalt.err (!%p398_p9)
}
 0x271   :  { %308 = dma.vmem_to_hbm [thread:$0]  %s306_s28, 128, %s514_s7, [#allocation4]  }
 0x272   :  { %412 = dma.done.wait [#allocation4], 128  }
 0x273   :  { %413 = vsyncadd [#allocation4], 4294967168 }
 0x274   :  { %312 = vsyncpa [#allocation3], 1 }
 0x275   :  { %313 = vsyncpa [#allocation4], 1 }

</bundles_post_ra>
